<compile_context>
chip_gen: v6e
topology: v6e:2x2x1
jax: 0.10.0
libtpu: 0.0.40
codegen_flags: <defaults>
</compile_context>

<pallas_src>
import functools

import jax
import jax.numpy as jnp
from jax.experimental import pallas as pl
from jax.experimental.pallas import tpu as pltpu

_LANE = 128
_SUBLANE = 8


def _round_up(x, m):
    return (x + m - 1) // m * m


def _lstm_fc_kernel(x_ref, wihd_ref, whh_ref, b_ref, wfc_ref, bfc_ref, out_ref,
                    *, seq_len, hidden):
    """Fused LSTM recurrence (T steps) + per-step FC accumulation, all in VMEM.

    x_ref:    [Bt, T*I]      flattened input tile (f32)
    wihd_ref: [T*I, T*4H]    block-diagonal input->gates weight (bf16)
    whh_ref:  [H, 4H]        hidden->gates weight (bf16)
    b_ref:    [1, T*4H]      combined bias (b_ih+b_hh) tiled over T (f32)
    wfc_ref:  [T, H, OP]     final FC weight, O padded to OP=128 (bf16)
    bfc_ref:  [1, OP]        final FC bias, padded (f32)
    out_ref:  [Bt, OP]       lane-dense output (f32)
    """
    T = seq_len
    H = hidden
    G = 4 * H                         # packed gate width (128 for H=32)
    Bt = x_ref.shape[0]
    OP = out_ref.shape[1]
    mdt = whh_ref.dtype               # MXU operand dtype (bf16)

    # ---- hoisted input projection for ALL steps: one MXU op, off the serial
    #      chain.  gx_all[:, t*G:(t+1)*G] == x_t @ w_ih^T + (b_ih + b_hh).
    gx_all = jnp.dot(x_ref[...].astype(mdt), wihd_ref[...],
                     preferred_element_type=jnp.float32) + b_ref[...]

    whh = whh_ref[...]                                        # [H, 4H]

    # Lane mask selecting the g-gate block (tanh); other lanes use sigmoid.
    lane = jax.lax.broadcasted_iota(jnp.int32, (Bt, G), 1)
    is_g = jnp.logical_and(lane >= 2 * H, lane < 3 * H)

    acc = jnp.zeros((Bt, OP), jnp.float32)
    c = None
    h_mx = None

    # T is small & static -> unrolled Python loop (LLO scheduler visibility).
    for t in range(T):
        g_lin = gx_all[:, t * G:(t + 1) * G]                  # 128-lane aligned
        if h_mx is not None:                                  # h_0 == 0: skip push
            g_lin = g_lin + jnp.dot(h_mx, whh,
                                    preferred_element_type=jnp.float32)
        # One EUP pass over the packed gates: sigmoid(x) = 0.5*(1 + tanh(x/2)).
        th = jnp.tanh(jnp.where(is_g, g_lin, 0.5 * g_lin))
        act = jnp.where(is_g, th, 0.5 * th + 0.5)             # σ(i)|σ(f)|tanh(g)|σ(o)
        # Realign the 32-lane gate sub-blocks (XLU lane rotates).
        i_b = act[:, 0 * H:1 * H]
        f_b = act[:, 1 * H:2 * H]
        g_b = act[:, 2 * H:3 * H]
        o_b = act[:, 3 * H:4 * H]
        c = i_b * g_b if c is None else f_b * c + i_b * g_b   # c_0 == 0
        # Single bf16 cast of h reused for this step's FC and next step's w_hh.
        h_mx = (o_b * jnp.tanh(c)).astype(mdt)                # [Bt, H]
        acc = acc + jnp.dot(h_mx, wfc_ref[t],
                            preferred_element_type=jnp.float32)

    out_ref[...] = acc + bfc_ref[...]


def prepare_params(raw_params, *, seq_len, hidden, output_size,
                   matmul_dtype=jnp.bfloat16):
    """Pack raw PyTorch-layout weights into the packed-gate kernel layout."""
    w_ih, w_hh, b_ih, b_hh, w_fc, b_fc = raw_params
    G = 4 * hidden
    OP = _round_up(output_size, _LANE)
    in_size = w_ih.shape[1]

    # Block-diagonal [T*I, T*4H]: one hoisted matmul computes the gate
    # pre-activations of every timestep; per-step slices stay lane-aligned.
    wih_t = w_ih.T.astype(jnp.float32)                         # [I, 4H]
    wih_diag = jnp.zeros((seq_len * in_size, seq_len * G), jnp.float32)
    for t in range(seq_len):
        wih_diag = wih_diag.at[t * in_size:(t + 1) * in_size,
                               t * G:(t + 1) * G].set(wih_t)
    wih_diag = wih_diag.astype(matmul_dtype)

    # [4H, H] -> [H, 4H]; contraction dim is the true H (no zero-row padding,
    # no garbage-lane invariants needed).
    whh_t = w_hh.T.astype(matmul_dtype)

    # Combined bias tiled over T -> [1, T*4H] (f32).
    b = jnp.tile((b_ih + b_hh).astype(jnp.float32), (seq_len,))
    b = b.reshape(1, seq_len * G)

    # [O, T*H] -> [T, H, O] -> pad O -> [T, H, OP]
    wfc_t = w_fc.T.reshape(seq_len, hidden, output_size)
    wfc_t = jnp.pad(wfc_t, ((0, 0), (0, 0), (0, OP - output_size)))
    wfc_t = wfc_t.astype(matmul_dtype)

    bfc = jnp.pad(b_fc, (0, OP - output_size)).reshape(1, OP).astype(jnp.float32)
    return (wih_diag, whh_t, b, wfc_t, bfc)


def lstm_seq_to_one_forward(inp, kernel_params, *, pad=2, hidden=32,
                            output_size=45, batch_tile=None):
    """JAX wrapper reproducing LSTM_SeqToOne_GridSearch.forward (default config)."""
    assert inp.ndim == 4
    seq_len = 2 * pad + 1
    assert inp.shape[1] == seq_len
    B = inp.shape[0]
    num_joints_out = output_size // 3
    G = 4 * hidden
    OP = _round_up(output_size, _LANE)

    wih_diag, whh_t, b, wfc_t, bfc = kernel_params
    TI = wih_diag.shape[0]

    # input.view(B,T,-1) + permutes + time-major LSTM access == reading
    # x[b, t*I:(t+1)*I]; a contiguous reshape is free (no HBM transpose pass).
    x = inp.reshape(B, seq_len * inp.shape[2] * inp.shape[3]).astype(jnp.float32)
    assert x.shape[1] == TI

    if batch_tile is None:
        B8 = _round_up(B, _SUBLANE)
        # >= 2 grid tiles whenever the batch allows it (keeps both v7x TCs busy),
        # cap the tile at 512 rows and at ~8 MiB of f32 gate pre-activations.
        half = _round_up(-(-B8 // 2), _SUBLANE)
        gx_row_bytes = seq_len * G * 4
        cap = max(_SUBLANE,
                  (8 * 1024 * 1024 // gx_row_bytes) // _SUBLANE * _SUBLANE)
        batch_tile = max(_SUBLANE, min(512, half, cap))
    B_pad = _round_up(max(B, batch_tile), batch_tile)
    if B_pad != B:
        x = jnp.pad(x, ((0, B_pad - B), (0, 0)))

    grid = (B_pad // batch_tile,)
    kernel = functools.partial(_lstm_fc_kernel, seq_len=seq_len, hidden=hidden)

    out = pl.pallas_call(
        kernel,
        out_shape=jax.ShapeDtypeStruct((B_pad, OP), jnp.float32),
        grid_spec=pltpu.PrefetchScalarGridSpec(
            num_scalar_prefetch=0,
            grid=grid,
            in_specs=[
                pl.BlockSpec((batch_tile, TI), lambda i: (i, 0)),
                pl.BlockSpec(wih_diag.shape, lambda i: (0, 0)),
                pl.BlockSpec(whh_t.shape, lambda i: (0, 0)),
                pl.BlockSpec(b.shape, lambda i: (0, 0)),
                pl.BlockSpec(wfc_t.shape, lambda i: (0, 0, 0)),
                pl.BlockSpec(bfc.shape, lambda i: (0, 0)),
            ],
            out_specs=pl.BlockSpec((batch_tile, OP), lambda i: (i, 0)),
        ),
        compiler_params=pltpu.CompilerParams(
            dimension_semantics=("parallel",),
            vmem_limit_bytes=32 * 1024 * 1024),
    )(x, wih_diag, whh_t, b, wfc_t, bfc)

    out = out[:B, :output_size]          # drop batch / lane padding
    return out.reshape(B, 1, num_joints_out, 3)


def init_raw_params(key, *, input_size=30, hidden=32, seq_len=5, output_size=45):
    """Deterministic PyTorch-layout parameters (uniform, PyTorch-like scale)."""
    k = jax.random.split(key, 6)
    s_lstm = 1.0 / (hidden ** 0.5)
    s_fc = 1.0 / ((seq_len * hidden) ** 0.5)
    w_ih = jax.random.uniform(k[0], (4 * hidden, input_size), jnp.float32, -s_lstm, s_lstm)
    w_hh = jax.random.uniform(k[1], (4 * hidden, hidden), jnp.float32, -s_lstm, s_lstm)
    b_ih = jax.random.uniform(k[2], (4 * hidden,), jnp.float32, -s_lstm, s_lstm)
    b_hh = jax.random.uniform(k[3], (4 * hidden,), jnp.float32, -s_lstm, s_lstm)
    w_fc = jax.random.uniform(k[4], (output_size, seq_len * hidden), jnp.float32, -s_fc, s_fc)
    b_fc = jax.random.uniform(k[5], (output_size,), jnp.float32, -s_fc, s_fc)
    return (w_ih, w_hh, b_ih, b_hh, w_fc, b_fc)


def _reference_forward(inp, raw_params, *, pad=2, hidden=32, output_size=45):
    """Pure-JAX f32 reference of the same forward (PyTorch semantics)."""
    seq_len = 2 * pad + 1
    B = inp.shape[0]
    w_ih, w_hh, b_ih, b_hh, w_fc, b_fc = raw_params
    x = inp.reshape(B, seq_len, -1).astype(jnp.float32)
    x = jnp.transpose(x, (1, 0, 2))
    h = jnp.zeros((B, hidden), jnp.float32)
    c = jnp.zeros((B, hidden), jnp.float32)
    hs = []
    for t in range(seq_len):
        gates = x[t] @ w_ih.T + h @ w_hh.T + b_ih + b_hh
        i_g = jax.nn.sigmoid(gates[:, 0 * hidden:1 * hidden])
        f_g = jax.nn.sigmoid(gates[:, 1 * hidden:2 * hidden])
        g_g = jnp.tanh(gates[:, 2 * hidden:3 * hidden])
        o_g = jax.nn.sigmoid(gates[:, 3 * hidden:4 * hidden])
        c = f_g * c + i_g * g_g
        h = o_g * jnp.tanh(c)
        hs.append(h)
    feat = jnp.concatenate(hs, axis=-1)
    out = feat @ w_fc.T + b_fc
    return out.reshape(B, 1, output_size // 3, 3)


if __name__ == "__main__":
    # Module-consistent small shapes: pad=2 -> T=5, inputSize=30 (10 joints x 3),
    # outputSize=45 (15 joints x 3); hiddenLayerSize shrunk to 32 for the test.
    batch, pad, input_size, hidden, output_size = 2, 2, 30, 32, 45
    seq_len = 2 * pad + 1

    key = jax.random.PRNGKey(0)
    k_in, k_p = jax.random.split(key)
    # 4-D input: [B, T, num_joints_in, 3] with num_joints_in*3 == inputSize
    x = jax.random.normal(k_in, (batch, seq_len, input_size // 3, 3), jnp.float32)
    raw = init_raw_params(k_p, input_size=input_size, hidden=hidden,
                          seq_len=seq_len, output_size=output_size)
    kparams = prepare_params(raw, seq_len=seq_len, hidden=hidden,
                             output_size=output_size,
                             matmul_dtype=jnp.bfloat16)

    out = lstm_seq_to_one_forward(x, kparams, pad=pad, hidden=hidden,
                                  output_size=output_size)
    out = jax.block_until_ready(out)

    ref = _reference_forward(x, raw, pad=pad, hidden=hidden,
                             output_size=output_size)
    assert out.shape == (batch, 1, output_size // 3, 3)
    # bf16 MXU operands (f32 accumulation) -> loosened tolerance vs f32 reference.
    assert jnp.allclose(out, ref, atol=5e-2, rtol=5e-2), float(
        jnp.max(jnp.abs(out - ref)))

    print("KERNEL_OK")
</pallas_src>

<mosaic_0001>
module attributes {stable_mosaic.version = 11 : i64} {
  func.func @_lstm_fc_kernel(%arg0: i32, %arg1: memref<8x150xf32, #tpu.memory_space<vmem>>, %arg2: memref<150x640xbf16, #tpu.memory_space<vmem>>, %arg3: memref<32x128xbf16, #tpu.memory_space<vmem>>, %arg4: memref<1x640xf32, #tpu.memory_space<vmem>>, %arg5: memref<5x32x128xbf16, #tpu.memory_space<vmem>>, %arg6: memref<1x128xf32, #tpu.memory_space<vmem>>, %arg7: memref<8x128xf32, #tpu.memory_space<vmem>>) attributes {dimension_semantics = [#tpu.dimension_semantics<parallel>], iteration_bounds = array<i64: 1>, scalar_prefetch = 0 : i64, scratch_operands = 0 : i64, tpu.core_type = #tpu.core_type<tc>, window_params = [{transform_indices = @transform_0, window_bounds = array<i64: 8, 150>}, {pipeline_mode = #tpu.pipeline_mode<synchronous>, transform_indices = @transform_1, window_bounds = array<i64: 150, 640>}, {pipeline_mode = #tpu.pipeline_mode<synchronous>, transform_indices = @transform_2, window_bounds = array<i64: 32, 128>}, {pipeline_mode = #tpu.pipeline_mode<synchronous>, transform_indices = @transform_3, window_bounds = array<i64: 1, 640>}, {pipeline_mode = #tpu.pipeline_mode<synchronous>, transform_indices = @transform_4, window_bounds = array<i64: 5, 32, 128>}, {pipeline_mode = #tpu.pipeline_mode<synchronous>, transform_indices = @transform_5, window_bounds = array<i64: 1, 128>}, {transform_indices = @transform_6, window_bounds = array<i64: 8, 128>}]} {
    %c0 = arith.constant 0 : index
    %c0_0 = arith.constant 0 : index
    %0 = vector.load %arg1[%c0, %c0_0] : memref<8x150xf32, #tpu.memory_space<vmem>>, vector<8x150xf32>
    %1 = arith.truncf %0 : vector<8x150xf32> to vector<8x150xbf16>
    %c0_1 = arith.constant 0 : index
    %c0_2 = arith.constant 0 : index
    %2 = vector.load %arg2[%c0_1, %c0_2] : memref<150x640xbf16, #tpu.memory_space<vmem>>, vector<150x640xbf16>
    %cst = arith.constant dense<0.000000e+00> : vector<8x640xf32>
    %3 = tpu.matmul %1, %2, %cst {dimension_numbers = #tpu.dot_dimension_numbers<[1], [0], [0], [1], [0, 0, 1, 1], [], []>} : vector<8x150xbf16>, vector<150x640xbf16>, vector<8x640xf32> -> vector<8x640xf32>
    %c0_3 = arith.constant 0 : index
    %c0_4 = arith.constant 0 : index
    %4 = vector.load %arg4[%c0_3, %c0_4] : memref<1x640xf32, #tpu.memory_space<vmem>>, vector<1x640xf32>
    %5 = vector.broadcast %4 : vector<1x640xf32> to vector<8x640xf32>
    %6 = arith.addf %3, %5 : vector<8x640xf32>
    %c0_5 = arith.constant 0 : index
    %c0_6 = arith.constant 0 : index
    %7 = vector.load %arg3[%c0_5, %c0_6] : memref<32x128xbf16, #tpu.memory_space<vmem>>, vector<32x128xbf16>
    %8 = tpu.iota {dimensions = array<i32: 1>} : vector<8x128xi32>
    %c64_i32 = arith.constant 64 : i32
    %9 = vector.broadcast %c64_i32 : i32 to vector<8x128xi32>
    %10 = arith.cmpi sge, %8, %9 : vector<8x128xi32>
    %c96_i32 = arith.constant 96 : i32
    %11 = vector.broadcast %c96_i32 : i32 to vector<8x128xi32>
    %12 = arith.cmpi slt, %8, %11 : vector<8x128xi32>
    %13 = arith.andi %10, %12 : vector<8x128xi1>
    %cst_7 = arith.constant 0.000000e+00 : f32
    %14 = vector.broadcast %cst_7 : f32 to vector<8x128xf32>
    %15 = vector.extract_strided_slice %6 {offsets = [0, 0], sizes = [8, 128], strides = [1, 1]} : vector<8x640xf32> to vector<8x128xf32>
    %cst_8 = arith.constant 5.000000e-01 : f32
    %16 = vector.broadcast %cst_8 : f32 to vector<8x128xf32>
    %17 = arith.mulf %16, %15 : vector<8x128xf32>
    %18 = arith.select %13, %15, %17 : vector<8x128xi1>, vector<8x128xf32>
    %19 = math.tanh %18 : vector<8x128xf32>
    %cst_9 = arith.constant 5.000000e-01 : f32
    %20 = vector.broadcast %cst_9 : f32 to vector<8x128xf32>
    %21 = arith.mulf %20, %19 : vector<8x128xf32>
    %cst_10 = arith.constant 5.000000e-01 : f32
    %22 = vector.broadcast %cst_10 : f32 to vector<8x128xf32>
    %23 = arith.addf %21, %22 : vector<8x128xf32>
    %24 = arith.select %13, %19, %23 : vector<8x128xi1>, vector<8x128xf32>
    %25 = vector.extract_strided_slice %24 {offsets = [0, 0], sizes = [8, 32], strides = [1, 1]} : vector<8x128xf32> to vector<8x32xf32>
    %26 = vector.extract_strided_slice %24 {offsets = [0, 64], sizes = [8, 32], strides = [1, 1]} : vector<8x128xf32> to vector<8x32xf32>
    %27 = vector.extract_strided_slice %24 {offsets = [0, 96], sizes = [8, 32], strides = [1, 1]} : vector<8x128xf32> to vector<8x32xf32>
    %28 = arith.mulf %25, %26 : vector<8x32xf32>
    %29 = math.tanh %28 : vector<8x32xf32>
    %30 = arith.mulf %27, %29 : vector<8x32xf32>
    %31 = arith.truncf %30 : vector<8x32xf32> to vector<8x32xbf16>
    %c0_11 = arith.constant 0 : index
    %c0_12 = arith.constant 0 : index
    %c0_13 = arith.constant 0 : index
    %32 = vector.load %arg5[%c0_11, %c0_12, %c0_13] : memref<5x32x128xbf16, #tpu.memory_space<vmem>>, vector<1x32x128xbf16>
    %33 = vector.shape_cast %32 : vector<1x32x128xbf16> to vector<32x128xbf16>
    %cst_14 = arith.constant dense<0.000000e+00> : vector<8x128xf32>
    %34 = tpu.matmul %31, %33, %cst_14 {dimension_numbers = #tpu.dot_dimension_numbers<[1], [0], [0], [1], [0, 0, 1, 1], [], []>} : vector<8x32xbf16>, vector<32x128xbf16>, vector<8x128xf32> -> vector<8x128xf32>
    %35 = arith.addf %14, %34 : vector<8x128xf32>
    %36 = vector.extract_strided_slice %6 {offsets = [0, 128], sizes = [8, 128], strides = [1, 1]} : vector<8x640xf32> to vector<8x128xf32>
    %cst_15 = arith.constant dense<0.000000e+00> : vector<8x128xf32>
    %37 = tpu.matmul %31, %7, %cst_15 {dimension_numbers = #tpu.dot_dimension_numbers<[1], [0], [0], [1], [0, 0, 1, 1], [], []>} : vector<8x32xbf16>, vector<32x128xbf16>, vector<8x128xf32> -> vector<8x128xf32>
    %38 = arith.addf %36, %37 : vector<8x128xf32>
    %cst_16 = arith.constant 5.000000e-01 : f32
    %39 = vector.broadcast %cst_16 : f32 to vector<8x128xf32>
    %40 = arith.mulf %39, %38 : vector<8x128xf32>
    %41 = arith.select %13, %38, %40 : vector<8x128xi1>, vector<8x128xf32>
    %42 = math.tanh %41 : vector<8x128xf32>
    %cst_17 = arith.constant 5.000000e-01 : f32
    %43 = vector.broadcast %cst_17 : f32 to vector<8x128xf32>
    %44 = arith.mulf %43, %42 : vector<8x128xf32>
    %cst_18 = arith.constant 5.000000e-01 : f32
    %45 = vector.broadcast %cst_18 : f32 to vector<8x128xf32>
    %46 = arith.addf %44, %45 : vector<8x128xf32>
    %47 = arith.select %13, %42, %46 : vector<8x128xi1>, vector<8x128xf32>
    %48 = vector.extract_strided_slice %47 {offsets = [0, 0], sizes = [8, 32], strides = [1, 1]} : vector<8x128xf32> to vector<8x32xf32>
    %49 = vector.extract_strided_slice %47 {offsets = [0, 32], sizes = [8, 32], strides = [1, 1]} : vector<8x128xf32> to vector<8x32xf32>
    %50 = vector.extract_strided_slice %47 {offsets = [0, 64], sizes = [8, 32], strides = [1, 1]} : vector<8x128xf32> to vector<8x32xf32>
    %51 = vector.extract_strided_slice %47 {offsets = [0, 96], sizes = [8, 32], strides = [1, 1]} : vector<8x128xf32> to vector<8x32xf32>
    %52 = arith.mulf %49, %28 : vector<8x32xf32>
    %53 = arith.mulf %48, %50 : vector<8x32xf32>
    %54 = arith.addf %52, %53 : vector<8x32xf32>
    %55 = math.tanh %54 : vector<8x32xf32>
    %56 = arith.mulf %51, %55 : vector<8x32xf32>
    %57 = arith.truncf %56 : vector<8x32xf32> to vector<8x32xbf16>
    %c1 = arith.constant 1 : index
    %c0_19 = arith.constant 0 : index
    %c0_20 = arith.constant 0 : index
    %58 = vector.load %arg5[%c1, %c0_19, %c0_20] : memref<5x32x128xbf16, #tpu.memory_space<vmem>>, vector<1x32x128xbf16>
    %59 = vector.shape_cast %58 : vector<1x32x128xbf16> to vector<32x128xbf16>
    %cst_21 = arith.constant dense<0.000000e+00> : vector<8x128xf32>
    %60 = tpu.matmul %57, %59, %cst_21 {dimension_numbers = #tpu.dot_dimension_numbers<[1], [0], [0], [1], [0, 0, 1, 1], [], []>} : vector<8x32xbf16>, vector<32x128xbf16>, vector<8x128xf32> -> vector<8x128xf32>
    %61 = arith.addf %35, %60 : vector<8x128xf32>
    %62 = vector.extract_strided_slice %6 {offsets = [0, 256], sizes = [8, 128], strides = [1, 1]} : vector<8x640xf32> to vector<8x128xf32>
    %cst_22 = arith.constant dense<0.000000e+00> : vector<8x128xf32>
    %63 = tpu.matmul %57, %7, %cst_22 {dimension_numbers = #tpu.dot_dimension_numbers<[1], [0], [0], [1], [0, 0, 1, 1], [], []>} : vector<8x32xbf16>, vector<32x128xbf16>, vector<8x128xf32> -> vector<8x128xf32>
    %64 = arith.addf %62, %63 : vector<8x128xf32>
    %cst_23 = arith.constant 5.000000e-01 : f32
    %65 = vector.broadcast %cst_23 : f32 to vector<8x128xf32>
    %66 = arith.mulf %65, %64 : vector<8x128xf32>
    %67 = arith.select %13, %64, %66 : vector<8x128xi1>, vector<8x128xf32>
    %68 = math.tanh %67 : vector<8x128xf32>
    %cst_24 = arith.constant 5.000000e-01 : f32
    %69 = vector.broadcast %cst_24 : f32 to vector<8x128xf32>
    %70 = arith.mulf %69, %68 : vector<8x128xf32>
    %cst_25 = arith.constant 5.000000e-01 : f32
    %71 = vector.broadcast %cst_25 : f32 to vector<8x128xf32>
    %72 = arith.addf %70, %71 : vector<8x128xf32>
    %73 = arith.select %13, %68, %72 : vector<8x128xi1>, vector<8x128xf32>
    %74 = vector.extract_strided_slice %73 {offsets = [0, 0], sizes = [8, 32], strides = [1, 1]} : vector<8x128xf32> to vector<8x32xf32>
    %75 = vector.extract_strided_slice %73 {offsets = [0, 32], sizes = [8, 32], strides = [1, 1]} : vector<8x128xf32> to vector<8x32xf32>
    %76 = vector.extract_strided_slice %73 {offsets = [0, 64], sizes = [8, 32], strides = [1, 1]} : vector<8x128xf32> to vector<8x32xf32>
    %77 = vector.extract_strided_slice %73 {offsets = [0, 96], sizes = [8, 32], strides = [1, 1]} : vector<8x128xf32> to vector<8x32xf32>
    %78 = arith.mulf %75, %54 : vector<8x32xf32>
    %79 = arith.mulf %74, %76 : vector<8x32xf32>
    %80 = arith.addf %78, %79 : vector<8x32xf32>
    %81 = math.tanh %80 : vector<8x32xf32>
    %82 = arith.mulf %77, %81 : vector<8x32xf32>
    %83 = arith.truncf %82 : vector<8x32xf32> to vector<8x32xbf16>
    %c2 = arith.constant 2 : index
    %c0_26 = arith.constant 0 : index
    %c0_27 = arith.constant 0 : index
    %84 = vector.load %arg5[%c2, %c0_26, %c0_27] : memref<5x32x128xbf16, #tpu.memory_space<vmem>>, vector<1x32x128xbf16>
    %85 = vector.shape_cast %84 : vector<1x32x128xbf16> to vector<32x128xbf16>
    %cst_28 = arith.constant dense<0.000000e+00> : vector<8x128xf32>
    %86 = tpu.matmul %83, %85, %cst_28 {dimension_numbers = #tpu.dot_dimension_numbers<[1], [0], [0], [1], [0, 0, 1, 1], [], []>} : vector<8x32xbf16>, vector<32x128xbf16>, vector<8x128xf32> -> vector<8x128xf32>
    %87 = arith.addf %61, %86 : vector<8x128xf32>
    %88 = vector.extract_strided_slice %6 {offsets = [0, 384], sizes = [8, 128], strides = [1, 1]} : vector<8x640xf32> to vector<8x128xf32>
    %cst_29 = arith.constant dense<0.000000e+00> : vector<8x128xf32>
    %89 = tpu.matmul %83, %7, %cst_29 {dimension_numbers = #tpu.dot_dimension_numbers<[1], [0], [0], [1], [0, 0, 1, 1], [], []>} : vector<8x32xbf16>, vector<32x128xbf16>, vector<8x128xf32> -> vector<8x128xf32>
    %90 = arith.addf %88, %89 : vector<8x128xf32>
    %cst_30 = arith.constant 5.000000e-01 : f32
    %91 = vector.broadcast %cst_30 : f32 to vector<8x128xf32>
    %92 = arith.mulf %91, %90 : vector<8x128xf32>
    %93 = arith.select %13, %90, %92 : vector<8x128xi1>, vector<8x128xf32>
    %94 = math.tanh %93 : vector<8x128xf32>
    %cst_31 = arith.constant 5.000000e-01 : f32
    %95 = vector.broadcast %cst_31 : f32 to vector<8x128xf32>
    %96 = arith.mulf %95, %94 : vector<8x128xf32>
    %cst_32 = arith.constant 5.000000e-01 : f32
    %97 = vector.broadcast %cst_32 : f32 to vector<8x128xf32>
    %98 = arith.addf %96, %97 : vector<8x128xf32>
    %99 = arith.select %13, %94, %98 : vector<8x128xi1>, vector<8x128xf32>
    %100 = vector.extract_strided_slice %99 {offsets = [0, 0], sizes = [8, 32], strides = [1, 1]} : vector<8x128xf32> to vector<8x32xf32>
    %101 = vector.extract_strided_slice %99 {offsets = [0, 32], sizes = [8, 32], strides = [1, 1]} : vector<8x128xf32> to vector<8x32xf32>
    %102 = vector.extract_strided_slice %99 {offsets = [0, 64], sizes = [8, 32], strides = [1, 1]} : vector<8x128xf32> to vector<8x32xf32>
    %103 = vector.extract_strided_slice %99 {offsets = [0, 96], sizes = [8, 32], strides = [1, 1]} : vector<8x128xf32> to vector<8x32xf32>
    %104 = arith.mulf %101, %80 : vector<8x32xf32>
    %105 = arith.mulf %100, %102 : vector<8x32xf32>
    %106 = arith.addf %104, %105 : vector<8x32xf32>
    %107 = math.tanh %106 : vector<8x32xf32>
    %108 = arith.mulf %103, %107 : vector<8x32xf32>
    %109 = arith.truncf %108 : vector<8x32xf32> to vector<8x32xbf16>
    %c3 = arith.constant 3 : index
    %c0_33 = arith.constant 0 : index
    %c0_34 = arith.constant 0 : index
    %110 = vector.load %arg5[%c3, %c0_33, %c0_34] : memref<5x32x128xbf16, #tpu.memory_space<vmem>>, vector<1x32x128xbf16>
    %111 = vector.shape_cast %110 : vector<1x32x128xbf16> to vector<32x128xbf16>
    %cst_35 = arith.constant dense<0.000000e+00> : vector<8x128xf32>
    %112 = tpu.matmul %109, %111, %cst_35 {dimension_numbers = #tpu.dot_dimension_numbers<[1], [0], [0], [1], [0, 0, 1, 1], [], []>} : vector<8x32xbf16>, vector<32x128xbf16>, vector<8x128xf32> -> vector<8x128xf32>
    %113 = arith.addf %87, %112 : vector<8x128xf32>
    %114 = vector.extract_strided_slice %6 {offsets = [0, 512], sizes = [8, 128], strides = [1, 1]} : vector<8x640xf32> to vector<8x128xf32>
    %cst_36 = arith.constant dense<0.000000e+00> : vector<8x128xf32>
    %115 = tpu.matmul %109, %7, %cst_36 {dimension_numbers = #tpu.dot_dimension_numbers<[1], [0], [0], [1], [0, 0, 1, 1], [], []>} : vector<8x32xbf16>, vector<32x128xbf16>, vector<8x128xf32> -> vector<8x128xf32>
    %116 = arith.addf %114, %115 : vector<8x128xf32>
    %cst_37 = arith.constant 5.000000e-01 : f32
    %117 = vector.broadcast %cst_37 : f32 to vector<8x128xf32>
    %118 = arith.mulf %117, %116 : vector<8x128xf32>
    %119 = arith.select %13, %116, %118 : vector<8x128xi1>, vector<8x128xf32>
    %120 = math.tanh %119 : vector<8x128xf32>
    %cst_38 = arith.constant 5.000000e-01 : f32
    %121 = vector.broadcast %cst_38 : f32 to vector<8x128xf32>
    %122 = arith.mulf %121, %120 : vector<8x128xf32>
    %cst_39 = arith.constant 5.000000e-01 : f32
    %123 = vector.broadcast %cst_39 : f32 to vector<8x128xf32>
    %124 = arith.addf %122, %123 : vector<8x128xf32>
    %125 = arith.select %13, %120, %124 : vector<8x128xi1>, vector<8x128xf32>
    %126 = vector.extract_strided_slice %125 {offsets = [0, 0], sizes = [8, 32], strides = [1, 1]} : vector<8x128xf32> to vector<8x32xf32>
    %127 = vector.extract_strided_slice %125 {offsets = [0, 32], sizes = [8, 32], strides = [1, 1]} : vector<8x128xf32> to vector<8x32xf32>
    %128 = vector.extract_strided_slice %125 {offsets = [0, 64], sizes = [8, 32], strides = [1, 1]} : vector<8x128xf32> to vector<8x32xf32>
    %129 = vector.extract_strided_slice %125 {offsets = [0, 96], sizes = [8, 32], strides = [1, 1]} : vector<8x128xf32> to vector<8x32xf32>
    %130 = arith.mulf %127, %106 : vector<8x32xf32>
    %131 = arith.mulf %126, %128 : vector<8x32xf32>
    %132 = arith.addf %130, %131 : vector<8x32xf32>
    %133 = math.tanh %132 : vector<8x32xf32>
    %134 = arith.mulf %129, %133 : vector<8x32xf32>
    %135 = arith.truncf %134 : vector<8x32xf32> to vector<8x32xbf16>
    %c4 = arith.constant 4 : index
    %c0_40 = arith.constant 0 : index
    %c0_41 = arith.constant 0 : index
    %136 = vector.load %arg5[%c4, %c0_40, %c0_41] : memref<5x32x128xbf16, #tpu.memory_space<vmem>>, vector<1x32x128xbf16>
    %137 = vector.shape_cast %136 : vector<1x32x128xbf16> to vector<32x128xbf16>
    %cst_42 = arith.constant dense<0.000000e+00> : vector<8x128xf32>
    %138 = tpu.matmul %135, %137, %cst_42 {dimension_numbers = #tpu.dot_dimension_numbers<[1], [0], [0], [1], [0, 0, 1, 1], [], []>} : vector<8x32xbf16>, vector<32x128xbf16>, vector<8x128xf32> -> vector<8x128xf32>
    %139 = arith.addf %113, %138 : vector<8x128xf32>
    %c0_43 = arith.constant 0 : index
    %c0_44 = arith.constant 0 : index
    %140 = vector.load %arg6[%c0_43, %c0_44] : memref<1x128xf32, #tpu.memory_space<vmem>>, vector<1x128xf32>
    %141 = vector.broadcast %140 : vector<1x128xf32> to vector<8x128xf32>
    %142 = arith.addf %139, %141 : vector<8x128xf32>
    %c0_45 = arith.constant 0 : index
    %c0_46 = arith.constant 0 : index
    %143 = vector.load %arg7[%c0_45, %c0_46] : memref<8x128xf32, #tpu.memory_space<vmem>>, vector<8x128xf32>
    tpu.vector_store %arg7[%c0_45, %c0_46], %142 {strides = array<i32>} : memref<8x128xf32, #tpu.memory_space<vmem>>, vector<8x128xf32>,
    return
  }
  func.func @transform_0(%arg0: i32) -> (i32, i32) {
    %c0_i32 = arith.constant 0 : i32
    %c0_i32_0 = arith.constant 0 : i32
    return %arg0, %c0_i32 : i32, i32
  }
  func.func @transform_1(%arg0: i32) -> (i32, i32) {
    %c0_i32 = arith.constant 0 : i32
    %c0_i32_0 = arith.constant 0 : i32
    %c0_i32_1 = arith.constant 0 : i32
    return %c0_i32, %c0_i32_0 : i32, i32
  }
  func.func @transform_2(%arg0: i32) -> (i32, i32) {
    %c0_i32 = arith.constant 0 : i32
    %c0_i32_0 = arith.constant 0 : i32
    %c0_i32_1 = arith.constant 0 : i32
    return %c0_i32, %c0_i32_0 : i32, i32
  }
  func.func @transform_3(%arg0: i32) -> (i32, i32) {
    %c0_i32 = arith.constant 0 : i32
    %c0_i32_0 = arith.constant 0 : i32
    %c0_i32_1 = arith.constant 0 : i32
    return %c0_i32, %c0_i32_0 : i32, i32
  }
  func.func @transform_4(%arg0: i32) -> (i32, i32, i32) {
    %c0_i32 = arith.constant 0 : i32
    %c0_i32_0 = arith.constant 0 : i32
    %c0_i32_1 = arith.constant 0 : i32
    %c0_i32_2 = arith.constant 0 : i32
    return %c0_i32, %c0_i32_0, %c0_i32_1 : i32, i32, i32
  }
  func.func @transform_5(%arg0: i32) -> (i32, i32) {
    %c0_i32 = arith.constant 0 : i32
    %c0_i32_0 = arith.constant 0 : i32
    %c0_i32_1 = arith.constant 0 : i32
    return %c0_i32, %c0_i32_0 : i32, i32
  }
  func.func @transform_6(%arg0: i32) -> (i32, i32) {
    %c0_i32 = arith.constant 0 : i32
    %c0_i32_0 = arith.constant 0 : i32
    return %arg0, %c0_i32 : i32, i32
  }
}

</mosaic_0001>

<bundles_post_ra>
// kernel: tpu_custom_call.1
= control target key start
LH: loop header
LB: loop body
LE: loop exit
PB: predicated region body
PF: predicated region fallthrough
CT: control target
= control target key end

     0   :  { %11 = vsyncpa [#allocation3], 0  ;;  %s1822_s0 = inlined_call_operand.hbm [shape: f32[8,150], index: 0, kind: input, shape index: {}]   ;;  %s1823_s1 = inlined_call_operand.hbm [shape: bf16[150,640], index: 1, kind: input, shape index: {}]   ;;  %s1824_s2 = inlined_call_operand.hbm [shape: bf16[32,128], index: 2, kind: input, shape index: {}]   ;;  %s1825_s3 = inlined_call_operand.vmem [shape: f32[1,640], index: 3, kind: input, shape index: {}]   ;;  %s1826_s4 = inlined_call_operand.hbm [shape: bf16[5,32,128], index: 4, kind: input, shape index: {}]   ;;  %s1827_s5 = inlined_call_operand.vmem [shape: f32[1,128], index: 5, kind: input, shape index: {}]   ;;  %s1828_s6 = inlined_call_operand.hbm [shape: f32[8,128], index: 6, kind: output, shape index: {}]  }
   0x1   :  { %12 = vsyncpa [#allocation6], 0 }
   0x2   :  { %13 = vsyncpa [#allocation9], 0 }
   0x3   :  { %14 = vsyncpa [#allocation4], 0  ;;  %s1600_s21 = smov [#allocation5]  }
   0x4   :  { %s30_s22 = sshll.u32 %s1600_s21, 4  ;;  %s31_s22 = int_to_ptr.vmem [resolvable:$true] %s30_s22 }
   0x5   :  { %s1500_s23 = scalar_lea.vmem %s31_s22, 6080  ;;  %p1505_p1 = scmp.lt.s32.totalorder %s31_s22, %s31_s22 }
   0x6   :  { %p1501_p0 = scmp.ne.s32.totalorder %s31_s22, %s1500_s23  ;;  %p1506_p2 = scmp.lt.s32.totalorder %s1500_s23, %s1500_s23 }
   0x8   :  { %p1507_p3 = por %p1506_p2, %p1505_p1 }
   0xa   :  { %p1508_p4 = pnand %p1507_p3, %p1501_p0 }
   0xc   :  { %1511 = shalt.err (!%p1508_p4)
}
   0xd   :  { %s1601_s24 = smov 320   ;;  %s1602_s25 = smov 20  }
   0xe   :  { %36 = dma.hbm_to_vmem [thread:$0]  %s1823_s1, 6080, %s31_s22, [#allocation6], %s1601_s24, %s1601_s24, %s1602_s25  }
   0xf   :  { %s1603_s28 = smov [#allocation2]   ;;  %s1604_s30 = smov [#allocation7]  }
  0x10   :  { %s21_s29 = sshll.u32 %s1603_s28, 4  ;;  %s42_s7 = sshll.u32 %s1604_s30, 4  ;;  %s22_s29 = int_to_ptr.vmem [resolvable:$true] %s21_s29  ;;  %s43_s7 = int_to_ptr.vmem [resolvable:$true] %s42_s7 }
  0x11   :  { %s1520_s8 = scalar_lea.vmem %s22_s29, 256  ;;  %p1525_p6 = scmp.lt.s32.totalorder %s22_s29, %s22_s29 }
  0x12   :  { %p1521_p5 = scmp.ne.s32.totalorder %s22_s29, %s1520_s8  ;;  %p1526_p7 = scmp.lt.s32.totalorder %s1520_s8, %s1520_s8 }
  0x14   :  { %p1527_p8 = por %p1526_p7, %p1525_p6 }
  0x16   :  { %p1528_p9 = pnand %p1527_p8, %p1521_p5 }
  0x18   :  { %1531 = shalt.err (!%p1528_p9)
}
  0x19   :  { %24 = dma.hbm_to_vmem [thread:$0]  %s1822_s0, 256, %s22_s29, [#allocation3]  }
  0x1a   :  { %s1540_s11 = scalar_lea.vmem %s43_s7, 256  ;;  %p1545_p11 = scmp.lt.s32.totalorder %s43_s7, %s43_s7 }
  0x1b   :  { %p1541_p10 = scmp.ne.s32.totalorder %s43_s7, %s1540_s11  ;;  %p1546_p12 = scmp.lt.s32.totalorder %s1540_s11, %s1540_s11 }
  0x1d   :  { %p1547_p13 = por %p1546_p12, %p1545_p11 }
  0x1f   :  { %p1548_p0 = pnand %p1547_p13, %p1541_p10 }
  0x21   :  { %1551 = shalt.err (!%p1548_p0)
}
  0x22   :  { %s1605_s1 = smov 64   ;;  %s1606_s12 = smov 4  }
  0x23   :  { %48 = dma.hbm_to_vmem [thread:$0]  %s1824_s2, 256, %s43_s7, [#allocation6], %s1605_s1, %s1605_s1, %s1606_s12  }
  0x24   :  { %s1607_s15 = smov [#allocation8]  }
  0x25   :  { %s56_s16 = sshll.u32 %s1607_s15, 4  ;;  %s57_s16 = int_to_ptr.vmem [resolvable:$true] %s56_s16 }
  0x26   :  { %s1560_s0 = scalar_lea.vmem %s57_s16, 1280  ;;  %p1565_p2 = scmp.lt.s32.totalorder %s57_s16, %s57_s16 }
  0x27   :  { %p1561_p1 = scmp.ne.s32.totalorder %s57_s16, %s1560_s0  ;;  %p1566_p3 = scmp.lt.s32.totalorder %s1560_s0, %s1560_s0 }
  0x29   :  { %p1567_p4 = por %p1566_p3, %p1565_p2 }
  0x2b   :  { %p1568_p5 = pnand %p1567_p4, %p1561_p1 }
  0x2d   :  { %1571 = shalt.err (!%p1568_p5)
}
  0x2e   :  { %62 = dma.hbm_to_vmem [thread:$0]  %s1826_s4, 1280, %s57_s16, [#allocation9], %s1605_s1, %s1605_s1, %s1606_s12  }
  0x2f   :  { %1592 = dma.done.wait [#allocation3], 256  }
  0x30   :  { %1593 = vsyncadd [#allocation3], 4294967040 }
  0x31   :  { %1594 = dma.done.wait [#allocation6], 6336  }
  0x32   :  { %1595 = vsyncadd [#allocation6], 4294960960 }
  0x33   :  { %1596 = dma.done.wait [#allocation9], 1280  }
  0x34   :  { %1597 = vsyncadd [#allocation9], 4294966016  ;;  %v1392_v0 = vld [vmem:[#allocation5 + $0x11c] ss:$20 sps:$4 sm:$0xff]   ;;  %v1394_v1 = vld [vmem:[#allocation5 + $0x118] ss:$20 sps:$4 sm:$0xff]   ;;  %v141_v26 = vlaneseq }
  0x35   :  { %433 = vmatprep.subr.bf16.mxu0 %v1392_v0  ;;  %v1395_v2 = vld [vmem:[#allocation5 + $0xf4] ss:$20 sps:$4 sm:$0xff]   ;;  %v1397_v3 = vld [vmem:[#allocation5 + $0xf0] ss:$20 sps:$4 sm:$0xff]   ;;  %v1398_v4 = vld [vmem:[#allocation5 + $0xcc] ss:$20 sps:$4 sm:$0xff]  }
  0x36   :  { %434 = vmatpush1.bf16.msra.mxu0 %v1394_v1  ;;  %v1400_v5 = vld [vmem:[#allocation5 + $0xc8] ss:$20 sps:$4 sm:$0xff]   ;;  %v1401_v6 = vld [vmem:[#allocation5 + $0xa4] ss:$20 sps:$4 sm:$0xff]   ;;  %v1403_v7 = vld [vmem:[#allocation5 + $0xa0] ss:$20 sps:$4 sm:$0xff]  }
  0x37   :  { %435 = vmatprep.subr.bf16.mxu0 %v1395_v2  ;;  %v1404_v8 = vld [vmem:[#allocation5 + $0x7c] ss:$20 sps:$4 sm:$0xff]   ;;  %v136_v9 = vld [vmem:[#allocation5 + $0x168] sm:$0x77]  ;;  %vm413_vm0 = vcmask 179200   ;;  %vm417_vm1 = vcmask 1042432  }
  0x38   :  { %v79_v10 = vld [vmem:[#allocation2 + $0x8] sm:$0xff]  ;;  %v1407_v13 = vld [vmem:[#allocation5 + $0x54] ss:$20 sps:$4 sm:$0xff]   ;;  %v1247_v14 = vcombine.low %v136_v9, %v136_v9  ;;  %v1409_v15 = vld [vmem:[#allocation5 + $0x50] ss:$20 sps:$4 sm:$0xff]   ;;  %v1248_v21 = vcombine.high %v136_v9, %v136_v9  ;;  %v1673_v27 = vshrl.u32 %v141_v26, 7 }
  0x39   :  { %v1406_v11 = vld [vmem:[#allocation5 + $0x78] ss:$20 sps:$4 sm:$0xff]   ;;  %v81_v12 = vpack.c.bf16 %v79_v10, %v79_v10  ;;  %v1412_v18 = vld [vmem:[#allocation5 + $0x28] ss:$20 sps:$4 sm:$0xff]   ;;  %v1415_v20 = vld [vmem:[#allocation5] ss:$20 sps:$4 sm:$0xff]  }
  0x3a   :  { %436 = vmatpush1.bf16.msra.mxu0 %v1397_v3  ;;  %v1410_v16 = vld [vmem:[#allocation5 + $0x2c] ss:$20 sps:$4 sm:$0xff]   ;;  %v419_v17 = vsel %vm417_vm1, %v1247_v14, 0  ;;  %v1413_v19 = vld [vmem:[#allocation5 + $0x4] ss:$20 sps:$4 sm:$0xff]   ;;  %v78_v24 = vld [vmem:[#allocation2] sm:$0xff] }
  0x3b   :  { %437 = vmatprep.subr.bf16.mxu0 %v1398_v4  ;;  %1253 = vmatprep.mubr.msk.bf16.mxu0 %vm413_vm0, %v81_v12  ;;  %v1418_v22 = vld [vmem:[#allocation5 + $0x144] ss:$20 sps:$4 sm:$0xff]   ;;  %v1420_v23 = vld [vmem:[#allocation5 + $0x140] ss:$20 sps:$4 sm:$0xff]   ;;  %v1669_v25 = vpack.c.bf16 %v78_v24, %v78_v24  ;;  %v143_v28 = vsub.s32 0, %v1673_v27  ;;  %v560_v30 = vand.u32 127, %v141_v26 }
  0x3c   :  { %1255 = vmatprep.mubr.msk.bf16.mxu1 %vm413_vm0, %v81_v12  ;;  %v1679_v29 = vld [vmem:[%s1825_s3] sm:$0x1f]  ;;  %v1421_v46 = vld [vmem:[#allocation5 + $0x124] ss:$20 sps:$4 sm:$0xff]   ;;  %v1430_v53 = vld [vmem:[#allocation5 + $0xac] ss:$20 sps:$4 sm:$0xff]  }
  0x3d   :  { %v144_v31 = vrot.slane %v1679_v29, %v143_v28  ;;  %vm561_vm2 = vcmp.ge.s32.totalorder %v560_v30, 64  ;;  %vm562_vm3 = vcmp.lt.s32.totalorder %v560_v30, 96  ;;  %v1423_v47 = vld [vmem:[#allocation5 + $0x120] ss:$20 sps:$4 sm:$0xff]   ;;  %v1424_v48 = vld [vmem:[#allocation5 + $0xfc] ss:$20 sps:$4 sm:$0xff]   ;;  %474 = vmatprep.subr.bf16.mxu1 %v1421_v46 }
  0x3e   :  { %438 = vmatpush1.bf16.msra.mxu0 %v1400_v5  ;;  %vm1682_vm4 = vmand %vm561_vm2, %vm562_vm3  ;;  %475 = vmatpush1.bf16.msra.mxu1 %v1423_v47  ;;  %v1426_v49 = vld [vmem:[#allocation5 + $0xf8] ss:$20 sps:$4 sm:$0xff]   ;;  %v1427_v50 = vld [vmem:[#allocation5 + $0xd4] ss:$20 sps:$4 sm:$0xff]   ;;  %s1608_s3 = smov 96   ;;  %s1609_s19 = smov 32  }
  0x3f   :  { %439 = vmatprep.subr.bf16.mxu0 %v1401_v6  ;;  %476 = vmatprep.subr.bf16.mxu1 %v1424_v48  ;;  %v1429_v51 = vld [vmem:[#allocation5 + $0xd0] ss:$20 sps:$4 sm:$0xff]   ;;  %v1432_v54 = vld [vmem:[#allocation5 + $0xa8] ss:$20 sps:$4 sm:$0xff]   ;;  %v1435_v56 = vld [vmem:[#allocation5 + $0x80] ss:$20 sps:$4 sm:$0xff]  }
  0x40   :  { %v1433_v55 = vld [vmem:[#allocation5 + $0x84] ss:$20 sps:$4 sm:$0xff]   ;;  %v1436_v57 = vld [vmem:[#allocation5 + $0x5c] ss:$20 sps:$4 sm:$0xff]   ;;  %v1439_v59 = vld [vmem:[#allocation5 + $0x34] ss:$20 sps:$4 sm:$0xff]  }
  0x41   :  { %v1438_v58 = vld [vmem:[#allocation5 + $0x58] ss:$20 sps:$4 sm:$0xff]   ;;  %v1441_v60 = vld [vmem:[#allocation5 + $0x30] ss:$20 sps:$4 sm:$0xff]   ;;  %v1444_v63 = vld [vmem:[#allocation5 + $0x8] ss:$20 sps:$4 sm:$0xff]  }
  0x42   :  { %440 = vmatpush1.bf16.msra.mxu0 %v1403_v7  ;;  %477 = vmatpush1.bf16.msra.mxu1 %v1426_v49  ;;  %v1442_v61 = vld [vmem:[#allocation5 + $0xc] ss:$20 sps:$4 sm:$0xff]   ;;  %v137_v62 = vld [vmem:[#allocation5 + $0x170] sm:$0x77]  ;;  %v1449_v4 = vld [vmem:[#allocation5 + $0x148] ss:$20 sps:$4 sm:$0xff]  }
  0x43   :  { %441 = vmatprep.subr.bf16.mxu0 %v1404_v8  ;;  %478 = vmatprep.subr.bf16.mxu1 %v1427_v50  ;;  %v1250_v0 = vcombine.high %v137_v62, %v137_v62  ;;  %v1249_v1 = vcombine.low %v137_v62, %v137_v62  ;;  %v1447_v3 = vld [vmem:[#allocation5 + $0x14c] ss:$20 sps:$4 sm:$0xff]   ;;  %v1700_v5 = vld [vmem:[#allocation7 + $0x8] sm:$0xff]   ;;  %v1610_v6 = vmov 0.0   ;;  %vm1611_vm5 = vmmov 0   ;;  %v1454_v46 = vld [vmem:[#allocation8 + $0x8] sm:$0xff]  }
  0x44   :  { %v1705_v7 = vld [vmem:[#allocation7] sm:$0xff]   ;;  %vm601_vm6 = vcmask 261120   ;;  %v1455_v48 = vld [vmem:[#allocation8] sm:$0xff]   ;;  %s1613_s22 = smov [#allocation10]  }
  0x45   :  { %v425_v2 = vsel %vm417_vm1, %v1249_v1, 0  ;;  %s1191_s23 = sshll.u32 %s1613_s22, 4  ;;  %s1192_s23 = int_to_ptr.vmem [resolvable:$true] %s1191_s23 }
  0x46   :  { %442 = vmatpush1.bf16.msra.mxu0 %v1406_v11  ;;  %479 = vmatpush1.bf16.msra.mxu1 %v1429_v51  ;;  %s1572_s24 = scalar_lea.vmem %s1192_s23, 128  ;;  %p1577_p7 = scmp.lt.s32.totalorder %s1192_s23, %s1192_s23 }
  0x47   :  { %443 = vmatprep.subr.bf16.mxu0 %v1407_v13  ;;  %480 = vmatprep.subr.bf16.mxu1 %v1430_v53  ;;  %v151_v53 = vsub.s32 2, %v1673_v27  ;;  %p1573_p6 = scmp.ne.s32.totalorder %s1192_s23, %s1572_s24  ;;  %p1578_p8 = scmp.lt.s32.totalorder %s1572_s24, %s1572_s24 }
  0x49   :  { %p1579_p9 = por %p1578_p8, %p1577_p7 }
  0x4a   :  { %444 = vmatpush1.bf16.msra.mxu0 %v1409_v15  ;;  %481 = vmatpush1.bf16.msra.mxu1 %v1432_v54 }
  0x4b   :  { %445 = vmatprep.subr.bf16.mxu0 %v1410_v16  ;;  %482 = vmatprep.subr.bf16.mxu1 %v1433_v55  ;;  %v147_v16 = vsub.s32 1, %v1673_v27  ;;  %p1580_p10 = pnand %p1579_p9, %p1573_p6 }
  0x4e   :  { %446 = vmatpush1.bf16.msra.mxu0 %v1412_v18  ;;  %483 = vmatpush1.bf16.msra.mxu1 %v1435_v56 }
  0x4f   :  { %447 = vmatprep.subr.bf16.mxu0 %v1413_v19  ;;  %484 = vmatprep.subr.bf16.mxu1 %v1436_v57  ;;  %v152_v57 = vrot.slane %v1679_v29, %v151_v53 }
  0x52   :  { %448 = vmatpush1.bf16.msra.mxu0 %v1415_v20  ;;  %485 = vmatpush1.bf16.msra.mxu1 %v1438_v58 }
  0x53   :  { %1252 = vmatprep.subr.msk.bf16.mxu0 %vm417_vm1, %v1248_v21  ;;  %486 = vmatprep.subr.bf16.mxu1 %v1439_v59 }
  0x56   :  { %462 = vmatpush2.bf16.msra.mxu0 %v419_v17  ;;  %487 = vmatpush1.bf16.msra.mxu1 %v1441_v60  ;;  %v148_v17 = vrot.slane %v1679_v29, %v147_v16 }
  0x57   :  { %463 = vmatprep.subr.bf16.mxu0 %v1418_v22  ;;  %488 = vmatprep.subr.bf16.mxu1 %v1442_v61 }
  0x5a   :  { %464 = vmatpush2.bf16.msra.mxu0 %v1420_v23  ;;  %489 = vmatpush1.bf16.msra.mxu1 %v1444_v63 }
  0x5b   :  { %1254 = vmatprep.subr.msk.bf16.mxu1 %vm417_vm1, %v1250_v0 }
  0x5d   :  { %466 = vmatmul.mubr.bf16.vlgmr.msra.gmra.mxu0 %v1669_v25 }
  0x5e   :  { %1256 = vmatprep.mubr.msk.bf16.mxu0 %vm413_vm0, %v81_v12  ;;  %503 = vmatpush2.bf16.msra.mxu1 %v425_v2 }
  0x5f   :  { %504 = vmatprep.subr.bf16.mxu1 %v1447_v3 }
  0x62   :  { %505 = vmatpush2.bf16.msra.mxu1 %v1449_v4 }
  0x63   :  { %1306 = vmatprep.subr.bf16.mxu1 %v1610_v6 }
  0x65   :  { %507 = vmatmul.mubr.bf16.vlgmr.msra.gmra.mxu1 %v1669_v25 }
  0x66   :  { %1307 = vmatpush3.bf16.msra.mxu1 %v1700_v5  ;;  %1310 = vmatprep.mubr.msk.bf16.mxu1 %vm1611_vm5, %v1610_v6 }
  0x67   :  { %1308 = vmatprep.subr.bf16.mxu1 %v1610_v6 }
  0x6a   :  { %1309 = vmatpush3.bf16.msra.mxu1 %v1705_v7 }
  0x6b   :  { %1314 = vmatprep.subr.bf16.mxu1 %v1610_v6 }
 0x11d   :  { %v467_v32 = vpop.f32.mrf.mxu0 }
 0x11e   :  { %v468_v33 = vadd.f32 %v467_v32, %v144_v31 }
 0x11f   :  { %v1686_v35 = vpop.f32.mrf.mxu0 }
 0x120   :  { %v564_v36 = vmul.f32 0.5, %v468_v33  ;;  %v470_v18 = vadd.f32 %v1686_v35, %v148_v17  ;;  %v1456_v17 = vld [vmem:[#allocation5 + $0x128] ss:$20 sps:$4 sm:$0xff]  }
 0x121   :  { %v471_v37 = vpop.f32.mrf.mxu0 }
 0x122   :  { %v565_v38 = vsel %vm1682_vm4, %v468_v33, %v564_v36 }
 0x123   :  { %1472 = vtanh.f32 %v565_v38  ;;  %v472_v39 = vpop.f32.mrf.mxu0 }
 0x125   :  { %v1714_v11 = vpop.f32.mrf.mxu1 }
 0x126   :  { %v509_v60 = vadd.f32 %v1714_v11, %v152_v57 }
 0x127   :  { %v1716_v12 = vpop.f32.mrf.mxu1 }
 0x129   :  { %v512_v13 = vpop.f32.mrf.mxu1 }
 0x12b   :  { %v513_v14 = vpop.f32.mrf.mxu1 }
 0x130   :  { %v1473_v40 = vpop.eup %1472 }
 0x131   :  { %v567_v41 = vmul.f32 0.5, %v1473_v40 }
 0x133   :  { %v568_v42 = vadd.f32 0.5, %v567_v41  ;;  %v1453_v41 = vld [vmem:[#allocation8 + $0x10] sm:$0xff]  }
 0x135   :  { %v1692_v43 = vsel %vm1682_vm4, %v1473_v40, %v568_v42  ;;  %v1452_v40 = vld [vmem:[#allocation8 + $0x18] sm:$0xff]  }
 0x136   :  { %571 = vrot.lane.b32.xlu0 %v1692_v43, %s1605_s1 }
 0x1a8   :  { %v572_v44 = vpop.permute.xlu0 %571 }
 0x1a9   :  { %v574_v45 = vmul.f32 %v572_v44, %v1692_v43 }
 0x1ab   :  { %1474 = vtanh.f32 %v574_v45 }
 0x1b8   :  { %v1475_v52 = vpop.eup %1474 }
 0x1b9   :  { %577 = vrot.lane.b32.xlu0 %v1475_v52, %s1608_s3 }
 0x1bd   :  { %653 = vrot.lane.b32.xlu0 %v574_v45, %s1609_s19 }
 0x22b   :  { %v578_v8 = vpop.permute.xlu0 %577 }
 0x22c   :  { %v580_v9 = vmul.f32 %v578_v8, %v1692_v43 }
 0x22e   :  { %v581_v10 = vpack.c.bf16 %v580_v9, %v580_v9 }
 0x22f   :  { %v654_v36 = vpop.permute.xlu0 %653 }
 0x230   :  { %587 = vrot.lane.b32.xlu1 %v581_v10, %s1609_s19 }
 0x2a2   :  { %v588_v15 = vpop.permute.xlu1 %587 }
 0x2a3   :  { %1311 = vmatmul.mubr.msk.bf16.vlgmr.msra.gmra.mxu1 %vm601_vm6, %v588_v15 }
 0x2a4   :  { %1318 = vmatprep.mubr.msk.bf16.mxu1 %vm1611_vm5, %v1610_v6  ;;  %1315 = vmatpush3.bf16.msra.mxu1 %v1452_v40 }
 0x2a5   :  { %1316 = vmatprep.subr.bf16.mxu1 %v1610_v6 }
 0x2a8   :  { %1317 = vmatpush3.bf16.msra.mxu1 %v1453_v41 }
 0x2a9   :  { %1322 = vmatprep.subr.bf16.mxu1 %v1610_v6 }
 0x363   :  { %v639_v19 = vpop.f32.mrf.mxu1 }
 0x364   :  { %v645_v20 = vadd.f32 %v639_v19, %v470_v18  ;;  %v1466_v18 = vld [vmem:[#allocation8 + $0x28] sm:$0xff]   ;;  %v1612_v19 = vmov 0  }
 0x365   :  { %v1312_v21 = vpop.f32.mrf.mxu1  ;;  %515 = vmatprep.subr.bf16.mxu0 %v1612_v19 }
 0x366   :  { %v646_v22 = vmul.f32 0.5, %v645_v20  ;;  %516 = vmatpush1.bf16.msra.mxu0 %v1456_v17  ;;  %v1467_v21 = vld [vmem:[#allocation8 + $0x20] sm:$0xff]  }
 0x367   :  { %v642_v23 = vpop.f32.mrf.mxu1  ;;  %517 = vmatprep.subr.bf16.mxu0 %v1612_v19 }
 0x368   :  { %v647_v24 = vsel %vm1682_vm4, %v645_v20, %v646_v22  ;;  %v1457_v20 = vld [vmem:[#allocation5 + $0x100] ss:$20 sps:$4 sm:$0xff]   ;;  %v1458_v22 = vld [vmem:[#allocation5 + $0xd8] ss:$20 sps:$4 sm:$0xff]  }
 0x369   :  { %1476 = vtanh.f32 %v647_v24  ;;  %v1313_v26 = vpop.f32.mrf.mxu1  ;;  %v1459_v24 = vld [vmem:[#allocation5 + $0xb0] ss:$20 sps:$4 sm:$0xff]  }
 0x36a   :  { %518 = vmatpush1.bf16.msra.mxu0 %v1457_v20  ;;  %v1460_v26 = vld [vmem:[#allocation5 + $0x88] ss:$20 sps:$4 sm:$0xff]  }
 0x36b   :  { %519 = vmatprep.subr.bf16.mxu0 %v1612_v19 }
 0x36e   :  { %520 = vmatpush1.bf16.msra.mxu0 %v1458_v22 }
 0x36f   :  { %521 = vmatprep.subr.bf16.mxu0 %v1612_v19 }
 0x372   :  { %522 = vmatpush1.bf16.msra.mxu0 %v1459_v24 }
 0x373   :  { %523 = vmatprep.subr.bf16.mxu0 %v1612_v19 }
 0x376   :  { %v1477_v28 = vpop.eup %1476  ;;  %524 = vmatpush1.bf16.msra.mxu0 %v1460_v26 }
 0x377   :  { %v649_v30 = vmul.f32 0.5, %v1477_v28  ;;  %525 = vmatprep.subr.bf16.mxu0 %v1612_v19 }
 0x379   :  { %v650_v31 = vadd.f32 0.5, %v649_v30  ;;  %v1462_v30 = vld [vmem:[#allocation5 + $0x38] ss:$20 sps:$4 sm:$0xff]  }
 0x37b   :  { %v651_v32 = vsel %vm1682_vm4, %v1477_v28, %v650_v31  ;;  %v1461_v28 = vld [vmem:[#allocation5 + $0x60] ss:$20 sps:$4 sm:$0xff]   ;;  %v1463_v31 = vld [vmem:[#allocation5 + $0x10] ss:$20 sps:$4 sm:$0xff]  }
 0x37c   :  { %658 = vrot.lane.b32.xlu1 %v651_v32, %s1605_s1  ;;  %v656_v37 = vmul.f32 %v654_v36, %v651_v32  ;;  %526 = vmatpush1.bf16.msra.mxu0 %v1461_v28 }
 0x37d   :  { %527 = vmatprep.subr.bf16.mxu0 %v1612_v19 }
 0x380   :  { %528 = vmatpush1.bf16.msra.mxu0 %v1462_v30 }
 0x381   :  { %529 = vmatprep.subr.bf16.mxu0 %v1612_v19 }
 0x384   :  { %530 = vmatpush1.bf16.msra.mxu0 %v1463_v31 }
 0x385   :  { %543 = vmatprep.subr.bf16.mxu0 %v1612_v19 }
 0x3ee   :  { %v659_v33 = vpop.permute.xlu1 %658 }
 0x3ef   :  { %v661_v35 = vmul.f32 %v659_v33, %v651_v32 }
 0x3f1   :  { %663 = vrot.lane.b32.xlu1 %v661_v35, %s1609_s19  ;;  %v1465_v35 = vld [vmem:[#allocation5 + $0x150] ss:$20 sps:$4 sm:$0xff]  }
 0x463   :  { %v664_v38 = vpop.permute.xlu1 %663 }
 0x464   :  { %v666_v39 = vadd.f32 %v664_v38, %v656_v37 }
 0x466   :  { %1478 = vtanh.f32 %v666_v39 }
 0x473   :  { %v1479_v42 = vpop.eup %1478 }
 0x474   :  { %669 = vrot.lane.b32.xlu0 %v1479_v42, %s1605_s1 }
 0x4e6   :  { %v670_v43 = vpop.permute.xlu0 %669 }
 0x4e7   :  { %v672_v44 = vmul.f32 %v670_v43, %v651_v32  ;;  %v1464_v32 = vld [vmem:[#allocation5 + $0x178] ss:$0 sps:$4 sm:$0x77]   ;;  %v155_v43 = vsub.s32 3, %v1673_v27 }
 0x4e8   :  { %v431_v33 = vsel %vm417_vm1, %v1464_v32, 0 }
 0x4e9   :  { %v673_v45 = vpack.c.bf16 %v672_v44, %v672_v44  ;;  %544 = vmatpush2.bf16.msra.mxu0 %v431_v33  ;;  %v156_v44 = vrot.slane %v1679_v29, %v155_v43  ;;  %v1278_v43 = vld [vmem:[%s1827_s5] ss:$0 sm:$0xff] }
 0x4ea   :  { %545 = vmatprep.subr.bf16.mxu0 %v1612_v19 }
 0x4eb   :  { %680 = vrot.lane.b32.xlu1 %v673_v45, %s1609_s19  ;;  %v511_v45 = vadd.f32 %v1716_v12, %v156_v44 }
 0x4ed   :  { %546 = vmatpush2.bf16.msra.mxu0 %v1465_v35 }
 0x4ee   :  { %1346 = vmatprep.subr.bf16.mxu0 %v1610_v6 }
 0x4f0   :  { %548 = vmatmul.mubr.bf16.vlgmr.msra.gmra.mxu0 %v1669_v25 }
 0x4f1   :  { %1347 = vmatpush3.bf16.msra.mxu0 %v1700_v5  ;;  %1350 = vmatprep.mubr.msk.bf16.mxu0 %vm1611_vm5, %v1610_v6 }
 0x4f2   :  { %1348 = vmatprep.subr.bf16.mxu0 %v1610_v6 }
 0x4f5   :  { %1349 = vmatpush3.bf16.msra.mxu0 %v1705_v7 }
 0x4f6   :  { %1362 = vmatprep.subr.bf16.mxu0 %v1610_v6 }
 0x55d   :  { %v681_v47 = vpop.permute.xlu1 %680 }
 0x55e   :  { %1319 = vmatmul.mubr.msk.bf16.vlgmr.msra.gmra.mxu1 %vm601_vm6, %v681_v47 }
 0x55f   :  { %1323 = vmatpush3.bf16.msra.mxu1 %v1454_v46  ;;  %1326 = vmatprep.mubr.msk.bf16.mxu1 %vm1611_vm5, %v1610_v6 }
 0x560   :  { %1324 = vmatprep.subr.bf16.mxu1 %v1610_v6 }
 0x563   :  { %1325 = vmatpush3.bf16.msra.mxu1 %v1455_v48 }
 0x564   :  { %1330 = vmatprep.subr.bf16.mxu1 %v1610_v6 }
 0x566   :  { %1327 = vmatmul.mubr.msk.bf16.vlgmr.msra.gmra.mxu1 %vm601_vm6, %v588_v15 }
 0x567   :  { %1331 = vmatpush3.bf16.msra.mxu1 %v1700_v5  ;;  %1334 = vmatprep.mubr.msk.bf16.mxu1 %vm1611_vm5, %v1610_v6 }
 0x568   :  { %1332 = vmatprep.subr.bf16.mxu1 %v1610_v6 }
 0x56b   :  { %1333 = vmatpush3.bf16.msra.mxu1 %v1705_v7 }
 0x56c   :  { %1338 = vmatprep.subr.bf16.mxu1 %v1610_v6 }
 0x56e   :  { %1335 = vmatmul.mubr.msk.bf16.vlgmr.msra.gmra.mxu1 %vm601_vm6, %v681_v47 }
 0x56f   :  { %1342 = vmatprep.mubr.msk.bf16.mxu1 %vm1611_vm5, %v1610_v6  ;;  %1339 = vmatpush3.bf16.msra.mxu1 %v1466_v18 }
 0x570   :  { %1340 = vmatprep.subr.bf16.mxu1 %v1610_v6 }
 0x573   :  { %1341 = vmatpush3.bf16.msra.mxu1 %v1467_v21 }
 0x574   :  { %1354 = vmatprep.subr.bf16.mxu1 %v1610_v6 }
 0x61e   :  { %v731_v49 = vpop.f32.mrf.mxu1 }
 0x620   :  { %v1320_v50 = vpop.f32.mrf.mxu1 }
 0x622   :  { %v734_v51 = vpop.f32.mrf.mxu1 }
 0x624   :  { %v1321_v52 = vpop.f32.mrf.mxu1 }
 0x626   :  { %v783_v54 = vpop.f32.mrf.mxu1 }
 0x627   :  { %v1750_v55 = vadd.f32 %v783_v54, %v731_v49 }
 0x628   :  { %v1328_v56 = vpop.f32.mrf.mxu1 }
 0x62a   :  { %v786_v58 = vpop.f32.mrf.mxu1 }
 0x62c   :  { %v1329_v59 = vpop.f32.mrf.mxu1 }
 0x62e   :  { %v823_v61 = vpop.f32.mrf.mxu1 }
 0x62f   :  { %v829_v62 = vadd.f32 %v823_v61, %v509_v60 }
 0x630   :  { %v1336_v63 = vpop.f32.mrf.mxu1 }
 0x631   :  { %v830_v0 = vmul.f32 0.5, %v829_v62 }
 0x632   :  { %v826_v1 = vpop.f32.mrf.mxu1 }
 0x633   :  { %v831_v2 = vsel %vm1682_vm4, %v829_v62, %v830_v0  ;;  %v1468_v0 = vld [vmem:[#allocation8 + $0x38] sm:$0xff]   ;;  %v1469_v1 = vld [vmem:[#allocation8 + $0x30] sm:$0xff]  }
 0x634   :  { %1480 = vtanh.f32 %v831_v2  ;;  %v1337_v3 = vpop.f32.mrf.mxu1 }
 0x641   :  { %v1481_v4 = vpop.eup %1480 }
 0x642   :  { %v833_v8 = vmul.f32 0.5, %v1481_v4 }
 0x644   :  { %v834_v9 = vadd.f32 0.5, %v833_v8 }
 0x646   :  { %v835_v10 = vsel %vm1682_vm4, %v1481_v4, %v834_v9 }
 0x647   :  { %838 = vrot.lane.b32.xlu0 %v835_v10, %s1605_s1  ;;  %v836_v14 = vmul.f32 %v835_v10, %v666_v39  ;;  %v549_v39 = vpop.f32.mrf.mxu0 }
 0x649   :  { %v551_v40 = vpop.f32.mrf.mxu0 }
 0x64b   :  { %v552_v41 = vpop.f32.mrf.mxu0 }
 0x64d   :  { %v553_v25 = vpop.f32.mrf.mxu0 }
 0x6b9   :  { %v839_v13 = vpop.permute.xlu0 %838 }
 0x6ba   :  { %v841_v11 = vmul.f32 %v839_v13, %v835_v10 }
 0x6bc   :  { %843 = vrot.lane.b32.xlu1 %v841_v11, %s1609_s19 }
 0x72e   :  { %v844_v15 = vpop.permute.xlu1 %843 }
 0x72f   :  { %v1760_v16 = vadd.f32 %v844_v15, %v836_v14 }
 0x731   :  { %1482 = vtanh.f32 %v1760_v16 }
 0x73e   :  { %v1483_v23 = vpop.eup %1482 }
 0x73f   :  { %849 = vrot.lane.b32.xlu0 %v1483_v23, %s1605_s1 }
 0x7b1   :  { %v850_v36 = vpop.permute.xlu0 %849 }
 0x7b2   :  { %v852_v37 = vmul.f32 %v850_v36, %v835_v10  ;;  %v159_v10 = vsub.s32 4, %v1673_v27 }
 0x7b4   :  { %v853_v38 = vpack.c.bf16 %v852_v37, %v852_v37  ;;  %v160_v13 = vrot.slane %v1679_v29, %v159_v10  ;;  %v1470_v37 = vld [vmem:[#allocation8 + $0x48] sm:$0xff]  }
 0x7b6   :  { %860 = vrot.lane.b32.xlu1 %v853_v38, %s1609_s19  ;;  %v550_v11 = vadd.f32 %v549_v39, %v160_v13  ;;  %v1471_v38 = vld [vmem:[#allocation8 + $0x40] sm:$0xff]  }
 0x828   :  { %v861_v42 = vpop.permute.xlu1 %860 }
 0x829   :  { %1343 = vmatmul.mubr.msk.bf16.vlgmr.msra.gmra.mxu1 %vm601_vm6, %v861_v42  ;;  %1351 = vmatmul.mubr.msk.bf16.vlgmr.msra.gmra.mxu0 %vm601_vm6, %v861_v42 }
 0x82a   :  { %1363 = vmatpush3.bf16.msra.mxu0 %v1700_v5  ;;  %1366 = vmatprep.mubr.msk.bf16.mxu0 %vm1611_vm5, %v1610_v6 }
 0x82b   :  { %1364 = vmatprep.subr.bf16.mxu0 %v1610_v6  ;;  %1358 = vmatprep.mubr.msk.bf16.mxu1 %vm1611_vm5, %v1610_v6 }
 0x82c   :  { %1355 = vmatpush3.bf16.msra.mxu1 %v1468_v0 }
 0x82d   :  { %1356 = vmatprep.subr.bf16.mxu1 %v1610_v6 }
 0x82e   :  { %1365 = vmatpush3.bf16.msra.mxu0 %v1705_v7 }
 0x830   :  { %1357 = vmatpush3.bf16.msra.mxu1 %v1469_v1 }
 0x831   :  { %1370 = vmatprep.subr.bf16.mxu1 %v1610_v6 }
 0x8e9   :  { %v911_v46 = vpop.f32.mrf.mxu1  ;;  %v952_v47 = vpop.f32.mrf.mxu0 }
 0x8ea   :  { %v917_v5 = vadd.f32 %v911_v46, %v1750_v55  ;;  %v958_v48 = vadd.f32 %v952_v47, %v511_v45 }
 0x8eb   :  { %v1344_v49 = vpop.f32.mrf.mxu1  ;;  %v1352_v50 = vpop.f32.mrf.mxu0 }
 0x8ec   :  { %v959_v51 = vmul.f32 0.5, %v958_v48 }
 0x8ed   :  { %v914_v52 = vpop.f32.mrf.mxu1  ;;  %v955_v53 = vpop.f32.mrf.mxu0 }
 0x8ee   :  { %v960_v54 = vsel %vm1682_vm4, %v958_v48, %v959_v51 }
 0x8ef   :  { %1484 = vtanh.f32 %v960_v54  ;;  %v1345_v7 = vpop.f32.mrf.mxu1  ;;  %v1353_v56 = vpop.f32.mrf.mxu0 }
 0x8fc   :  { %v1485_v57 = vpop.eup %1484 }
 0x8fd   :  { %v962_v58 = vmul.f32 0.5, %v1485_v57 }
 0x8ff   :  { %v963_v59 = vadd.f32 0.5, %v962_v58 }
 0x901   :  { %v964_v12 = vsel %vm1682_vm4, %v1485_v57, %v963_v59 }
 0x902   :  { %967 = vrot.lane.b32.xlu0 %v964_v12, %s1605_s1  ;;  %v965_v61 = vmul.f32 %v964_v12, %v1760_v16 }
 0x974   :  { %v968_v55 = vpop.permute.xlu0 %967 }
 0x975   :  { %v970_v60 = vmul.f32 %v968_v55, %v964_v12 }
 0x977   :  { %972 = vrot.lane.b32.xlu1 %v970_v60, %s1609_s19 }
 0x9e9   :  { %v973_v62 = vpop.permute.xlu1 %972 }
 0x9ea   :  { %v975_v63 = vadd.f32 %v973_v62, %v965_v61 }
 0x9ec   :  { %1486 = vtanh.f32 %v975_v63 }
 0x9f9   :  { %v1487_v2 = vpop.eup %1486 }
 0x9fa   :  { %978 = vrot.lane.b32.xlu0 %v1487_v2, %s1605_s1 }
 0xa6c   :  { %v979_v3 = vpop.permute.xlu0 %978 }
 0xa6d   :  { %v981_v4 = vmul.f32 %v979_v3, %v964_v12 }
 0xa6f   :  { %v982_v8 = vpack.c.bf16 %v981_v4, %v981_v4 }
 0xa71   :  { %989 = vrot.lane.b32.xlu1 %v982_v8, %s1609_s19 }
 0xae3   :  { %v990_v9 = vpop.permute.xlu1 %989 }
 0xae4   :  { %1359 = vmatmul.mubr.msk.bf16.vlgmr.msra.gmra.mxu1 %vm601_vm6, %v990_v9  ;;  %1367 = vmatmul.mubr.msk.bf16.vlgmr.msra.gmra.mxu0 %vm601_vm6, %v990_v9 }
 0xae5   :  { %1374 = vmatprep.mubr.msk.bf16.mxu1 %vm1611_vm5, %v1610_v6  ;;  %1371 = vmatpush3.bf16.msra.mxu1 %v1470_v37 }
 0xae6   :  { %1372 = vmatprep.subr.bf16.mxu1 %v1610_v6 }
 0xae9   :  { %1373 = vmatpush3.bf16.msra.mxu1 %v1471_v38 }
 0xba4   :  { %v1040_v14 = vpop.f32.mrf.mxu1  ;;  %v1081_v15 = vpop.f32.mrf.mxu0 }
 0xba5   :  { %v1046_v16 = vadd.f32 %v1040_v14, %v917_v5  ;;  %v1087_v17 = vadd.f32 %v1081_v15, %v550_v11 }
 0xba6   :  { %v1360_v18 = vpop.f32.mrf.mxu1  ;;  %v1368_v19 = vpop.f32.mrf.mxu0 }
 0xba7   :  { %v1088_v20 = vmul.f32 0.5, %v1087_v17 }
 0xba8   :  { %v1043_v21 = vpop.f32.mrf.mxu1  ;;  %v1084_v22 = vpop.f32.mrf.mxu0 }
 0xba9   :  { %v1089_v23 = vsel %vm1682_vm4, %v1087_v17, %v1088_v20 }
 0xbaa   :  { %1488 = vtanh.f32 %v1089_v23  ;;  %v1361_v24 = vpop.f32.mrf.mxu1  ;;  %v1369_v26 = vpop.f32.mrf.mxu0 }
 0xbb7   :  { %v1489_v28 = vpop.eup %1488 }
 0xbb8   :  { %v1091_v27 = vmul.f32 0.5, %v1489_v28 }
 0xbba   :  { %v1092_v30 = vadd.f32 0.5, %v1091_v27 }
 0xbbc   :  { %v1093_v29 = vsel %vm1682_vm4, %v1489_v28, %v1092_v30 }
 0xbbd   :  { %1096 = vrot.lane.b32.xlu0 %v1093_v29, %s1605_s1  ;;  %v1094_v33 = vmul.f32 %v1093_v29, %v975_v63 }
 0xc2f   :  { %v1097_v31 = vpop.permute.xlu0 %1096 }
 0xc30   :  { %v1099_v32 = vmul.f32 %v1097_v31, %v1093_v29 }
 0xc32   :  { %1101 = vrot.lane.b32.xlu1 %v1099_v32, %s1609_s19 }
 0xca4   :  { %v1102_v35 = vpop.permute.xlu1 %1101 }
 0xca5   :  { %v1104_v36 = vadd.f32 %v1102_v35, %v1094_v33 }
 0xca7   :  { %1490 = vtanh.f32 %v1104_v36 }
 0xcb4   :  { %v1491_v39 = vpop.eup %1490 }
 0xcb5   :  { %1107 = vrot.lane.b32.xlu0 %v1491_v39, %s1605_s1 }
 0xd27   :  { %v1108_v34 = vpop.permute.xlu0 %1107 }
 0xd28   :  { %v1110_v40 = vmul.f32 %v1108_v34, %v1093_v29 }
 0xd2a   :  { %v1111_v41 = vpack.c.bf16 %v1110_v40, %v1110_v40 }
 0xd2c   :  { %1118 = vrot.lane.b32.xlu1 %v1111_v41, %s1609_s19 }
 0xd9e   :  { %v1119_v25 = vpop.permute.xlu1 %1118 }
 0xd9f   :  { %1375 = vmatmul.mubr.msk.bf16.vlgmr.msra.gmra.mxu1 %vm601_vm6, %v1119_v25 }
 0xe5f   :  { %v1169_v42 = vpop.f32.mrf.mxu1 }
 0xe60   :  { %v1175_v6 = vadd.f32 %v1169_v42, %v1046_v16 }
 0xe61   :  { %v1376_v44 = vpop.f32.mrf.mxu1 }
 0xe62   :  { %v1183_v45 = vadd.f32 %v1278_v43, %v1175_v6 }
 0xe63   :  { %v1172_v46 = vpop.f32.mrf.mxu1 }
 0xe64   :  { %1184 = vst [vmem:[#allocation10] sm:$0xff] %v1183_v45 }
 0xe65   :  { %v1377_v47 = vpop.f32.mrf.mxu1 }
 0xe66   :  { %1583 = shalt.err (!%p1580_p10)
}
 0xe67   :  { %1194 = dma.vmem_to_hbm [thread:$0]  %s1192_s23, 128, %s1828_s6, [#allocation4]  }
 0xe68   :  { %1598 = dma.done.wait [#allocation4], 128  }
 0xe69   :  { %1599 = vsyncadd [#allocation4], 4294967168 }
 0xe6a   :  { %1198 = vsyncpa [#allocation3], 1 }
 0xe6b   :  { %1199 = vsyncpa [#allocation6], 1 }
 0xe6c   :  { %1200 = vsyncpa [#allocation9], 1 }
 0xe6d   :  { %1201 = vsyncpa [#allocation4], 1 }

</bundles_post_ra>
